<compile_context>
chip_gen: v7x
topology: tpu7x:2x2x1
jax: 0.10.0
libtpu: 0.0.40
codegen_flags: <defaults>
</compile_context>

<pallas_src>
import jax
import jax.numpy as jnp
from jax.experimental import pallas as pl
from jax.experimental.pallas import tpu as pltpu

LANE = 128


def _round_up(x, m):
    return ((x + m - 1) // m) * m


def _cdiv(a, b):
    return (a + b - 1) // b


# --------------------------------------------------------------------------- #
# Kernels
# --------------------------------------------------------------------------- #
def _pff_resident_kernel(x_ref, w_ref, b_ref, o_ref):
    """y = x @ W + b with the whole weight resident in VMEM.

    x_ref: (tm, d_in)       streamed row tile
    w_ref: (n_j, d_in, tn)  full weight, constant block index (one HBM read)
    b_ref: (n_j, 1, tn)     full bias, constant block index
    o_ref: (tm, tn)         lane-dense output tile
    """
    j = pl.program_id(1)
    acc = jnp.dot(x_ref[...], w_ref[j], preferred_element_type=jnp.float32)
    o_ref[...] = (acc + b_ref[j].astype(jnp.float32)).astype(o_ref.dtype)


def _pff_ktiled_kernel(x_ref, w_ref, b_ref, o_ref, acc_ref):
    """Fallback for weights too large to keep resident: K-tiled, f32 accumulator."""
    k = pl.program_id(2)

    @pl.when(k == 0)
    def _init():
        acc_ref[...] = jnp.zeros_like(acc_ref)

    acc_ref[...] += jnp.dot(x_ref[...], w_ref[...],
                            preferred_element_type=jnp.float32)

    @pl.when(k == pl.num_programs(2) - 1)
    def _finish():
        o_ref[...] = (acc_ref[...]
                      + b_ref[...].astype(jnp.float32)).astype(o_ref.dtype)


# --------------------------------------------------------------------------- #
# Planning helpers
# --------------------------------------------------------------------------- #
def _vmem_budget_and_limit():
    """Generation-aware VMEM tiling budget and scoped-VMEM limit."""
    try:
        cap = int(pltpu.get_tpu_info().vmem_capacity_bytes)
    except Exception:          # query unavailable -> be conservative (v7x: 64 MiB)
        cap = 0
    if cap <= 0:
        cap = 64 * 1024 * 1024
    budget = int(0.60 * cap)                        # what the tiler aims for
    limit = int(min(0.78 * cap, cap - (8 << 20)))   # scoped-VMEM limit
    limit = max(limit, 32 << 20)
    return budget, limit


def _spec(block_shape, index_map, buffer_count=None):
    """BlockSpec with optional pipeline depth; degrades politely on old JAX."""
    if buffer_count is not None and hasattr(pl, "Buffered"):
        try:
            return pl.BlockSpec(block_shape, index_map,
                                pipeline_mode=pl.Buffered(buffer_count))
        except TypeError:      # no pipeline_mode kwarg in this JAX build
            pass
    return pl.BlockSpec(block_shape, index_map)


def _choose_plan(d_in, d_out, itemsize, budget, tm_req, max_tn):
    """Pick tile sizes.  Preference order:
      A) tn == full padded d_out, weight resident (1-D-ish grid over rows)
      B) tn in {512, 256}, weight still fully resident, multi output tile
      C) K-tiled streaming matmul (weight too big / d_in too wide)
    """
    sublane = max(8, 32 // itemsize)
    has_buffered = hasattr(pl, "Buffered")
    wbuf = 1 if has_buffered else 2
    tm_top = _round_up(max(tm_req, sublane), sublane)

    def tm_candidates(floor):
        floor = max(sublane, min(floor, tm_top))
        tms, cur = [], tm_top
        while True:
            tms.append(cur)
            if cur <= floor:
                break
            cur = max(floor, _round_up(max(cur // 2, sublane), sublane))
        return tms

    d_out_full = _round_up(d_out, LANE)

    # ---- Plans A/B: weight fully resident, x / out streamed ---------------- #
    tn_opts = [d_out_full] + [t for t in (512, 256) if t < d_out_full]
    if max_tn is not None:
        cap = _round_up(max_tn, LANE)
        tn_opts = [min(t, cap) for t in tn_opts]
    tn_opts = list(dict.fromkeys(tn_opts))
    for tn in tn_opts:
        d_out_pad = _round_up(d_out, tn)
        n_j = d_out_pad // tn
        xbuf = 3 if (n_j > 1 and has_buffered) else 2   # hide x DMA across j
        for tm in tm_candidates(256):                    # keep MXU LHS tall
            fp = ((xbuf * tm * d_in            # streamed x tiles
                   + 2 * tm * tn               # streamed out tiles
                   + wbuf * d_in * d_out_pad   # resident weight
                   + d_out_pad                 # resident bias
                   ) * itemsize
                  + tm * tn * 4)               # f32 dot intermediate
            if fp <= budget:
                return dict(kind="resident", tm=tm, tn=tn, n_j=n_j,
                            d_out_pad=d_out_pad, xbuf=xbuf, sublane=sublane)

    # ---- Plan C: K-tiled streaming ----------------------------------------- #
    tn_c = [t for t in (512, 256, 128) if t <= d_out_full]
    if max_tn is not None:
        tn_c = [min(t, _round_up(max_tn, LANE)) for t in tn_c]
    tn_c = list(dict.fromkeys(tn_c)) or [LANE]
    d_in_128 = _round_up(d_in, LANE)
    tk_c = [t for t in (1024, 512, 256) if t <= d_in_128] or [d_in_128]
    for tn in tn_c:
        for tk in tk_c:
            for tm in tm_candidates(128):
                fp = ((2 * tm * tk + 2 * tk * tn + 2 * tn + 2 * tm * tn)
                      * itemsize + tm * tn * 4)          # + f32 acc scratch
                if fp <= budget:
                    return dict(kind="ktiled", tm=tm, tn=tn, tk=tk,
                                d_out_pad=_round_up(d_out, tn),
                                d_in_pad=_round_up(d_in, tk), sublane=sublane)

    # Budget too small for any sane tiling: take the smallest tiles anyway
    # (the budget only steers tiling; the real scoped-VMEM limit is HW-derived).
    tn, tk = tn_c[-1], tk_c[-1]
    return dict(kind="ktiled", tm=min(128, tm_top), tn=tn, tk=tk,
                d_out_pad=_round_up(d_out, tn), d_in_pad=_round_up(d_in, tk),
                sublane=sublane)


# --------------------------------------------------------------------------- #
# Public API
# --------------------------------------------------------------------------- #
def make_position_feed_forward(weight, bias, *, tm=512, max_tn=None,
                               compute_dtype=None, vmem_budget_bytes=None):
    """Build fn(x) for fixed Conv1d(k=1) parameters.

    weight: (d_out, d_in)  (torch Conv1d weight with the k=1 axis squeezed)
    bias:   (d_out,)
    Parameter layout (transpose / pad / reshape / optional cast) happens once
    here, not per forward call.  Returns a jitted fn: (N, L, d_in)->(N, L, d_out).
    """
    weight = jnp.asarray(weight)
    bias = jnp.asarray(bias)
    d_out, d_in = weight.shape
    cdt = jnp.dtype(compute_dtype) if compute_dtype is not None else weight.dtype
    itemsize = cdt.itemsize

    budget, vmem_limit = _vmem_budget_and_limit()
    if vmem_budget_bytes is not None:
        budget = int(vmem_budget_bytes)

    plan = _choose_plan(d_in, d_out, itemsize, budget, tm, max_tn)
    sublane = plan["sublane"]
    tn = plan["tn"]
    d_out_pad = plan["d_out_pad"]

    # ---- one-time parameter layout ----------------------------------------- #
    w_t = weight.astype(cdt).T                                # (d_in, d_out)
    b_row = bias.astype(cdt).reshape(1, d_out)
    if d_out_pad != d_out:
        w_t = jnp.pad(w_t, ((0, 0), (0, d_out_pad - d_out)))
        b_row = jnp.pad(b_row, ((0, 0), (0, d_out_pad - d_out)))
    if plan["kind"] == "resident":
        n_j = plan["n_j"]
        w_prep = w_t.reshape(d_in, n_j, tn).transpose(1, 0, 2)   # (n_j, d_in, tn)
        b_prep = b_row.reshape(n_j, 1, tn)
    else:
        d_in_pad = plan["d_in_pad"]
        if d_in_pad != d_in:
            w_t = jnp.pad(w_t, ((0, d_in_pad - d_in), (0, 0)))
        w_prep, b_prep = w_t, b_row                              # (d_in_pad, d_out_pad)

    def _forward(x, w_arr, b_arr):
        N, L, d_in_x = x.shape
        if d_in_x != d_in:
            raise ValueError(f"expected last dim {d_in}, got {d_in_x}")
        out_dtype = x.dtype
        out_isize = jnp.dtype(out_dtype).itemsize
        M = N * L
        x2d = x.reshape(M, d_in)
        if x2d.dtype != cdt:
            x2d = x2d.astype(cdt)

        # Row tiling for this M (the plan's tm is an upper bound).
        tm_eff = min(plan["tm"], _round_up(M, sublane))
        n_i = _cdiv(M, tm_eff)
        if n_i == 1 and _round_up(M, sublane) >= 2 * sublane:
            # Keep the (megacore-)parallel row axis at >= 2 balanced steps.
            tm_eff = _round_up(_cdiv(M, 2), sublane)
            n_i = _cdiv(M, tm_eff)
        M_pad = n_i * tm_eff
        if M_pad != M:
            x2d = jnp.pad(x2d, ((0, M_pad - M), (0, 0)))

        if plan["kind"] == "resident":
            n_j = plan["n_j"]
            grid = (n_i, n_j)
            in_specs = [
                _spec((tm_eff, d_in), lambda i, j: (i, 0),
                      buffer_count=(plan["xbuf"] if plan["xbuf"] > 2 else None)),
                _spec((n_j, d_in, tn), lambda i, j: (0, 0, 0), buffer_count=1),
                _spec((n_j, 1, tn), lambda i, j: (0, 0, 0), buffer_count=1),
            ]
            out_spec = pl.BlockSpec((tm_eff, tn), lambda i, j: (i, j))
            kernel = _pff_resident_kernel
            scratch = []
            semantics = ("parallel", "parallel")
            w_bytes = d_in * d_out_pad * itemsize          # read exactly once
            x_bytes = M_pad * d_in * itemsize
        else:
            tk, d_in_pad = plan["tk"], plan["d_in_pad"]
            if d_in_pad != d_in:
                x2d = jnp.pad(x2d, ((0, 0), (0, d_in_pad - d_in)))
            n_j = d_out_pad // tn
            n_k = d_in_pad // tk
            grid = (n_i, n_j, n_k)
            in_specs = [
                pl.BlockSpec((tm_eff, tk), lambda i, j, k: (i, k)),
                pl.BlockSpec((tk, tn), lambda i, j, k: (k, j)),
                pl.BlockSpec((1, tn), lambda i, j, k: (0, j)),
            ]
            out_spec = pl.BlockSpec((tm_eff, tn), lambda i, j, k: (i, j))
            kernel = _pff_ktiled_kernel
            scratch = [pltpu.VMEM((tm_eff, tn), jnp.float32)]
            semantics = ("parallel", "parallel", "arbitrary")
            w_bytes = n_i * d_in_pad * d_out_pad * itemsize
            x_bytes = n_j * M_pad * d_in_pad * itemsize

        cost = pl.CostEstimate(
            flops=2 * M_pad * d_in * d_out_pad,
            transcendentals=0,
            bytes_accessed=int(x_bytes + w_bytes + d_out_pad * itemsize
                               + M_pad * d_out_pad * out_isize),
        )

        out2d = pl.pallas_call(
            kernel,
            out_shape=jax.ShapeDtypeStruct((M_pad, d_out_pad), out_dtype),
            grid_spec=pltpu.PrefetchScalarGridSpec(
                num_scalar_prefetch=0,
                grid=grid,
                in_specs=in_specs,
                out_specs=out_spec,
                scratch_shapes=scratch,
            ),
            compiler_params=pltpu.CompilerParams(
                dimension_semantics=semantics,
                vmem_limit_bytes=vmem_limit,
            ),
            cost_estimate=cost,
        )(x2d, w_arr, b_arr)

        return out2d[:M, :d_out].reshape(N, L, d_out)

    fwd = jax.jit(_forward)

    def apply(x):
        return fwd(x, w_prep, b_prep)

    return apply


def position_feed_forward(x, weight, bias, **kwargs):
    """Convenience one-shot wrapper: (N, L, d_in) -> (N, L, d_out)."""
    return make_position_feed_forward(weight, bias, **kwargs)(x)


# --------------------------------------------------------------------------- #
# Self-test
# --------------------------------------------------------------------------- #
if __name__ == "__main__":
    key = jax.random.PRNGKey(0)
    configs = [
        # (N, L, d_in, d_out, options, tolerance)
        (2, 16, 32, 64, {}, 1e-4),                  # plan A: full-width resident weight
        (2, 9, 48, 320, {}, 1e-4),                  # ragged M, d_out padded to 384, plan A
        (2, 16, 96, 384, dict(max_tn=128), 1e-4),   # plan B: resident weight, 3 output tiles
        (2, 32, 512, 384, dict(vmem_budget_bytes=1 << 20), 1e-4),  # plan C: K-tiled
        (2, 16, 64, 128, dict(compute_dtype=jnp.bfloat16), 5e-2),  # bf16 MXU path
    ]
    for (N, L, d_in, d_out, opts, tol) in configs:
        key, k_x, k_w, k_b = jax.random.split(key, 4)
        x = jax.random.normal(k_x, (N, L, d_in), dtype=jnp.float32)
        # Deterministic param init (matches torch Conv1d uniform(+-1/sqrt(fan_in)))
        bound = 1.0 / (d_in ** 0.5)
        weight = jax.random.uniform(k_w, (d_out, d_in), jnp.float32, -bound, bound)
        bias = jax.random.uniform(k_b, (d_out,), jnp.float32, -bound, bound)

        fn = make_position_feed_forward(weight, bias, **opts)
        out = jax.block_until_ready(fn(x))

        # Reference: same math as Conv1d with kernel_size=1.
        ref = jnp.einsum("nli,oi->nlo", x, weight) + bias
        assert out.shape == (N, L, d_out)
        err = float(jnp.max(jnp.abs(out.astype(jnp.float32) - ref)))
        assert jnp.allclose(out.astype(jnp.float32), ref, atol=tol, rtol=tol), (
            f"mismatch for {(N, L, d_in, d_out, opts)}: max abs err {err}")
    print("KERNEL_OK")
</pallas_src>

<mosaic_0001>
module attributes {stable_mosaic.version = 11 : i64} {
  func.func @_pff_resident_kernel(%arg0: i32, %arg1: i32, %arg2: memref<16x32xf32, #tpu.memory_space<vmem>>, %arg3: memref<1x32x128xf32, #tpu.memory_space<vmem>>, %arg4: memref<1x1x128xf32, #tpu.memory_space<vmem>>, %arg5: memref<16x128xf32, #tpu.memory_space<vmem>>) attributes {dimension_semantics = [#tpu.dimension_semantics<parallel>, #tpu.dimension_semantics<parallel>], iteration_bounds = array<i64: 2, 1>, scalar_prefetch = 0 : i64, scratch_operands = 0 : i64, tpu.core_type = #tpu.core_type<tc>, window_params = [{transform_indices = @transform_0, window_bounds = array<i64: 16, 32>}, {pipeline_mode = #tpu.pipeline_mode<synchronous>, transform_indices = @transform_1, window_bounds = array<i64: 1, 32, 128>}, {pipeline_mode = #tpu.pipeline_mode<synchronous>, transform_indices = @transform_2, window_bounds = array<i64: 1, 1, 128>}, {transform_indices = @transform_3, window_bounds = array<i64: 16, 128>}]} {
    %c0 = arith.constant 0 : index
    %c0_0 = arith.constant 0 : index
    %0 = vector.load %arg2[%c0, %c0_0] : memref<16x32xf32, #tpu.memory_space<vmem>>, vector<16x32xf32>
    %1 = arith.index_cast %arg1 : i32 to index
    %c0_1 = arith.constant 0 : index
    %c0_2 = arith.constant 0 : index
    %2 = vector.load %arg3[%1, %c0_1, %c0_2] : memref<1x32x128xf32, #tpu.memory_space<vmem>>, vector<1x32x128xf32>
    %3 = vector.shape_cast %2 : vector<1x32x128xf32> to vector<32x128xf32>
    %cst = arith.constant dense<0.000000e+00> : vector<16x128xf32>
    %4 = tpu.matmul %0, %3, %cst {dimension_numbers = #tpu.dot_dimension_numbers<[1], [0], [0], [1], [0, 0, 1, 1], [], []>} : vector<16x32xf32>, vector<32x128xf32>, vector<16x128xf32> -> vector<16x128xf32>
    %5 = arith.index_cast %arg1 : i32 to index
    %c0_3 = arith.constant 0 : index
    %c0_4 = arith.constant 0 : index
    %6 = vector.load %arg4[%5, %c0_3, %c0_4] : memref<1x1x128xf32, #tpu.memory_space<vmem>>, vector<1x1x128xf32>
    %7 = vector.shape_cast %6 : vector<1x1x128xf32> to vector<1x128xf32>
    %8 = vector.broadcast %7 : vector<1x128xf32> to vector<16x128xf32>
    %9 = arith.addf %4, %8 : vector<16x128xf32>
    %c0_5 = arith.constant 0 : index
    %c0_6 = arith.constant 0 : index
    %10 = vector.load %arg5[%c0_5, %c0_6] : memref<16x128xf32, #tpu.memory_space<vmem>>, vector<16x128xf32>
    tpu.vector_store %arg5[%c0_5, %c0_6], %9 {strides = array<i32>} : memref<16x128xf32, #tpu.memory_space<vmem>>, vector<16x128xf32>,
    return
  }
  func.func @transform_0(%arg0: i32, %arg1: i32) -> (i32, i32) {
    %c0_i32 = arith.constant 0 : i32
    %c0_i32_0 = arith.constant 0 : i32
    return %arg0, %c0_i32 : i32, i32
  }
  func.func @transform_1(%arg0: i32, %arg1: i32) -> (i32, i32, i32) {
    %c0_i32 = arith.constant 0 : i32
    %c0_i32_0 = arith.constant 0 : i32
    %c0_i32_1 = arith.constant 0 : i32
    %c0_i32_2 = arith.constant 0 : i32
    return %c0_i32, %c0_i32_0, %c0_i32_1 : i32, i32, i32
  }
  func.func @transform_2(%arg0: i32, %arg1: i32) -> (i32, i32, i32) {
    %c0_i32 = arith.constant 0 : i32
    %c0_i32_0 = arith.constant 0 : i32
    %c0_i32_1 = arith.constant 0 : i32
    %c0_i32_2 = arith.constant 0 : i32
    return %c0_i32, %c0_i32_0, %c0_i32_1 : i32, i32, i32
  }
  func.func @transform_3(%arg0: i32, %arg1: i32) -> (i32, i32) {
    %c0_i32 = arith.constant 0 : i32
    return %arg0, %arg1 : i32, i32
  }
}

</mosaic_0001>

<bundles_post_ra>
// kernel: _forward.1
= control target key start
LH: loop header
LB: loop body
LE: loop exit
PB: predicated region body
PF: predicated region fallthrough
CT: control target
= control target key end

     0   :  { %8 = vsyncpa [#allocation3], 0  ;;  %s956_s0 = inlined_call_operand.hbm [shape: f32[32,32], index: 0, kind: input, shape index: {}]   ;;  %s957_s1 = inlined_call_operand.hbm [shape: f32[1,32,128], index: 1, kind: input, shape index: {}]   ;;  %s958_s2 = inlined_call_operand.vmem [shape: f32[1,1,128], index: 2, kind: input, shape index: {}]   ;;  %s959_s3 = inlined_call_operand.hbm [shape: f32[32,128], index: 3, kind: output, shape index: {}]  }
   0x1   :  { %10 = vsyncpa [#allocation3 + $0x1], 0 }
   0x2   :  { %11 = vsyncpa [#allocation6], 0 }
   0x3   :  { %12 = vsyncpa [#allocation4], 0 }
   0x4   :  { %14 = vsyncpa [#allocation4 + $0x1], 0  ;;  %s728_s12 = smov 0   ;;  %s730_s13 = smov 0  }
   0x5   :  { %s732_s14 = smov 0   ;;  %s734_s15 = smov 0  }
   0x6   :  { %s736_s16 = smov 0   ;;  %s738_s17 = smov 0  }
   0x7 LB: > { %s431_s18 = sadd.s32 4294967295, %s699_s17   ;;  %s432_s19 = sadd.s32 4294967294, %s699_s17   ;;  %s699_s17 = sphi %s738_s17, %s20_s17   ;;  %s695_s16 = sphi %s736_s16, %s983_s16   ;;  %s691_s15 = sphi %s734_s15, %s982_s15   ;;  %s687_s14 = sphi %s732_s14, %s981_s14   ;;  %s683_s13 = sphi %s730_s13, %s980_s13   ;;  %s679_s12 = sphi %s728_s12, %s979_s12  }
   0x8   : > { %p52_p0 = scmp.ne.s32.totalorder %s683_s13, %s679_s12  ;;  %p762_p1 = scmp.eq.s32.totalorder %s431_s18, 0 }
   0x9   : > { %p766_p2 = scmp.eq.s32.totalorder %s431_s18, 1  ;;  %p126_p3 = scmp.eq.s32.totalorder %s432_s19, 1 }
   0xa   : > { %s964_s20 = scalar_select %p762_p1, 1, 0 }
   0xb   : > { %s965_s21 = scalar_select %p766_p2, 1, 0 }
   0xc   : > { %p772_p4 = por %p762_p1, %p52_p0  ;;  %p433_p5 = scmp.ge.s32.totalorder %s699_s17, 1 }
   0xd   : > { %p777_p6 = por %p126_p3, %p52_p0  ;;  %p133_p7 = scmp.lt.s32.totalorder %s699_s17, 3 }
   0xe   : > { %s966_s22 = scalar_select %p772_p4, 1, 0 }
   0xf   : > { %s967_s23 = scalar_select %p777_p6, 1, 0 }
  0x10   : > { %p782_p8 = pnand %p433_p5, %p133_p7  ;;  %s701_s25 = smov [#allocation5]  }
  0x11   : > { %s145_s26 = sshll.u32 %s701_s25, 4  ;;  %s32_s28 = sadd.s32 1, %s695_s16  ;;  %s146_s26 = int_to_ptr.vmem [resolvable:$true] %s145_s26 }
  0x12   : > { %s968_s24 = scalar_select %p782_p8, 1, 0 }
  0x13   : > { %p486_p9 = pneg %p782_p8  ;;  %s555_s4 = scalar_lea.hbm %s957_s1, 512 }
  0x14   : > { %p556_p12 = scmp.ne.s32.totalorder %s957_s1, %s555_s4  ;;  %p562_p5 = scmp.lt.u32.totalorder %s555_s4, %s957_s1 }
  0x15   : > { %p791_p11 = pnand %p486_p9, %p762_p1 }
  0x17   : > { %p557_p13 = pneg %p791_p11 }
  0x19   : > { %p558_p0 = pnand %p557_p13, %p556_p12 }
  0x1b   : > { %p559_p3 = pneg %p558_p0 }
  0x1d   : > { %p564_p7 = pnand %p562_p5, %p559_p3 }
  0x1f   : > { %567 = shalt.err (!%p564_p7)
}
  0x20   : > { %s568_s9 = scalar_lea.vmem %s146_s26, 512  ;;  %p576_p1 = scmp.lt.s32.totalorder %s146_s26, %s146_s26 }
  0x21   : > { %p569_p9 = scmp.ne.s32.totalorder %s146_s26, %s568_s9  ;;  %p577_p4 = scmp.lt.s32.totalorder %s568_s9, %s568_s9 }
  0x23   : > { %p571_p10 = pnand %p569_p9, %p557_p13  ;;  %p578_p8 = por %p577_p4, %p576_p1 }
  0x25   : > { %p572_p6 = pneg %p571_p10 }
  0x27   : > { %p579_p2 = pnand %p578_p8, %p572_p6 }
  0x29   : > { %582 = shalt.err (!%p579_p2)
}
  0x2a   : > { %s702_s10 = smov 128   ;;  %s703_s11 = smov 8  }
  0x2b   : > { %489 = dma.hbm_to_vmem [thread:$0]  (!%p791_p11), %s957_s1, 512, %s146_s26, [#allocation6], %s702_s10, %s702_s10, %s703_s11  }
  0x2c   : > { %p34_p1 = scmp.ge.s32.totalorder %s32_s28, 2  ;;  %s39_s25 = sadd.s32 1, %s687_s14 }
  0x2d   : > { %p46_p2 = scmp.ne.s32.totalorder %s687_s14, %s683_s13  ;;  %p47_p4 = scmp.eq.s32.totalorder %s699_s17, 0 }
  0x2e   : > { %s985_s28 = smov (%p34_p1, %s32_s28), 0  ;;  %p971_p8 = scmp.ne.s32.totalorder %s965_s21, 0 }
  0x2f   : > { %p821_p6 = por %p47_p4, %p46_p2  ;;  %s36_s30 = ssub.s32 %s695_s16, %s985_s28 }
  0x30   : > { %p827_p10 = por %p971_p8, %p46_p2  ;;  %p499_p12 = scmp.lt.s32.totalorder %s699_s17, 2 }
  0x31   : > { %p37_p11 = scmp.eq.s32.totalorder %s36_s30, 0  ;;  %s162_s26 = sand.u32 1, %s687_s14  }
  0x32   : > { %s436_s4 = sshll.u32 %s162_s26, 4  ;;  %s451_s6 = sshll.u32 %s695_s16, 8 }
  0x33   : > { %s836_s5 = scalar_select %p37_p11, %s687_s14, %s39_s25  }
  0x34   : > { %s842_s9 = scalar_lea.hbm %s956_s0, %s451_s6  ;;  %s166_s21 = scalar_lea.vmem [#allocation2], %s436_s4 }
  0x35   : > { %s173_s18 = sshll.u32 %s166_s21, 4  ;;  %p848_p13 = pnand %p499_p12, %p821_p6  ;;  %s844_s18 = int_to_ptr.vmem [resolvable:$true] %s173_s18 }
  0x36   : > { %s852_s25 = scalar_lea.sflag [#allocation3], %s162_s26  ;;  %s583_s30 = scalar_lea.hbm %s842_s9, 256 }
  0x37   : > { %p584_p0 = scmp.ne.s32.totalorder %s842_s9, %s583_s30  ;;  %p585_p3 = pneg %p848_p13 }
  0x38   : > { %s588_s29 = scalar_lea.hbm %s956_s0, 512  ;;  %p589_p9 = scmp.lt.u32.totalorder %s842_s9, %s956_s0 }
  0x39   : > { %p586_p5 = pnand %p585_p3, %p584_p0  ;;  %p590_p1 = scmp.lt.u32.totalorder %s588_s29, %s583_s30 }
  0x3a   : > { %p592_p4 = scmp.lt.u32.totalorder %s583_s30, %s842_s9 }
  0x3b   : > { %p587_p7 = pneg %p586_p5  ;;  %p591_p2 = por %p590_p1, %p589_p9 }
  0x3d   : > { %p593_p6 = por %p592_p4, %p591_p2 }
  0x3f   : > { %p594_p8 = pnand %p593_p6, %p587_p7 }
  0x41   : > { %597 = shalt.err (!%p594_p8)
}
  0x42   : > { %s598_s26 = scalar_lea.vmem %s844_s18, 256  ;;  %s704_s21 = smov [#allocation2]  }
  0x43   : > { %p599_p12 = scmp.ne.s32.totalorder %s844_s18, %s598_s26  ;;  %s603_s4 = sshll.u32 %s704_s21, 4  ;;  %s604_s4 = int_to_ptr.vmem [resolvable:$false] %s603_s4 }
  0x44   : > { %s605_s6 = scalar_lea.vmem %s604_s4, 512  ;;  %p606_p5 = scmp.lt.s32.totalorder %s844_s18, %s604_s4 }
  0x45   : > { %p601_p11 = pnand %p599_p12, %p585_p3  ;;  %p607_p9 = scmp.lt.s32.totalorder %s605_s6, %s598_s26 }
  0x47   : > { %p602_p0 = pneg %p601_p11  ;;  %p608_p1 = por %p607_p9, %p606_p5 }
  0x49   : > { %p609_p2 = pnand %p608_p1, %p602_p0 }
  0x4b   : > { %612 = shalt.err (!%p609_p2)
}
  0x4c   : > { %493 = dma.hbm_to_vmem [thread:$0]  (!%p848_p13), %s842_s9, 256, %s844_s18, %s852_s25, %s702_s10, %s702_s10, %s703_s11  }
  0x4d   : > { %p974_p3 = scmp.ne.s32.totalorder %s968_s24, 0 }
  0x4e   : > { %s886_s30 = sand.u32 (!%p974_p3), 1, %s683_s13   ;;  %p975_p7 = scmp.ne.s32.totalorder (!%p974_p3), %s966_s22, 0 }
  0x4f   : > { %185 = sbr.rel (%p974_p3) target bundleno = 331 (0x14b), region = 32  ;;  %s440_s29 = sshll.u32 (!%p974_p3), %s886_s30, 4 }
  0x50   : > { %s188_s7 = scalar_lea.sflag (!%p974_p3), [#allocation3], %s886_s30  ;;  %s191_s8 = scalar_lea.vmem (!%p974_p3), [#allocation2], %s440_s29 }
  0x56   : > { %666 = dma.done.wait (%p975_p7), %s188_s7, 256  }
  0x57   : > { %668 = vsyncadd (%p975_p7), %s188_s7, 4294967040  ;;  %p976_p4 = scmp.ne.s32.totalorder %s964_s20, 0 }
  0x59   : > { %670 = dma.done.wait (%p976_p4), [#allocation6], 512  }
  0x5a   : > { %672 = vsyncadd (%p976_p4), [#allocation6], 4294966784  ;;  %vm236_vm0 = vcmask 261120   ;;  %v224_v0 = vld [vmem:[#allocation5] sm:$0xff]  ;;  %v225_v1 = vld [vmem:[#allocation5 + $0x8] sm:$0xff]  ;;  %s217_s20 = scalar_lea.vmem [#allocation7], %s440_s29 }
  0x5b   : > { %v226_v2 = vld [vmem:[#allocation5 + $0x10] sm:$0xff]  ;;  %v470_v3 = vpack.c.bf16 %v225_v1, %v224_v0  ;;  %v227_v4 = vld [vmem:[#allocation5 + $0x18] sm:$0xff]  ;;  %s335_s22 = sshll.u32 %s217_s20, 4  ;;  %v443_v8 = vld [vmem:[%s958_s2] ss:$0 sm:$0xff]  ;;  %s452_s11 = sshll.u32 %s691_s15, 8  ;;  %s902_s22 = int_to_ptr.vmem [resolvable:$true] %s335_s22 }
  0x5c   : > { %v220_v5 = vld [vmem:[%s191_s8] sm:$0xff]  ;;  %v474_v6 = vpack.c.bf16 %v227_v4, %v226_v2  ;;  %v221_v7 = vld [vmem:[%s191_s8 + $0x8] sm:$0xff]  ;;  %s907_s19 = scalar_lea.hbm %s959_s3, %s452_s11  ;;  %s321_s25 = scalar_lea.sflag [#allocation4], %s886_s30 }
  0x5d   : > { %467 = vmatprep.mubr.msk.f32.mxu0 %vm236_vm0, %v220_v5  ;;  %471 = vmatprep.subr.bf16.mxu0 %v470_v3  ;;  %s613_s26 = scalar_lea.vmem %s902_s22, 256  ;;  %s705_s15 = smov [#allocation7]  }
  0x5e   : > { %473 = vmatpush3.bf16.msra.mxu0 %v470_v3  ;;  %p614_p13 = scmp.ne.s32.totalorder %s902_s22, %s613_s26  ;;  %s617_s21 = sshll.u32 %s705_s15, 4  ;;  %s618_s21 = int_to_ptr.vmem [resolvable:$false] %s617_s21 }
  0x5f   : > { %475 = vmatprep.subr.bf16.mxu0 %v474_v6  ;;  %s619_s4 = scalar_lea.vmem %s618_s21, 512  ;;  %p620_p12 = scmp.lt.s32.totalorder %s902_s22, %s618_s21 }
  0x60   : > { %p615_p6 = pnand %p614_p13, %p827_p10  ;;  %p621_p11 = scmp.lt.s32.totalorder %s619_s4, %s613_s26 }
  0x62   : > { %477 = vmatpush3.bf16.msra.mxu0 %v474_v6  ;;  %p616_p8 = pneg %p615_p6  ;;  %p622_p0 = por %p621_p11, %p620_p12 }
  0x64   : > { %p623_p5 = pnand %p622_p0, %p616_p8 }
  0x65   : > { %468 = vmatmul.mubr.msk.f32.vlgmr.msra.gmra.mrb[0].mxu0 %vm236_vm0, %v221_v7 }
 0x138   : > { %v469_v9 = vpop.f32.mrb[0].mxu0 }
 0x139   : > { %v315_v10 = vadd.f32 %v469_v9, %v443_v8  ;;  %v309_v11 = vpop.f32.mrb[1].mxu0 }
 0x13a   : > { %v310_v12 = vadd.f32 %v443_v8, %v309_v11 }
 0x13b   : > { %319 = vst [vmem:[%s217_s20 + $0x8] sm:$0xff] %v315_v10 }
 0x13c   : > { %318 = vst [vmem:[%s217_s20] sm:$0xff] %v310_v12 }
 0x13d   : > { %626 = shalt.err (!%p623_p5)
}
 0x13e   : > { %s627_s6 = scalar_lea.hbm %s907_s19, 256  ;;  %s631_s8 = scalar_lea.hbm %s959_s3, 512 }
 0x13f   : > { %p628_p9 = scmp.ne.s32.totalorder %s907_s19, %s627_s6  ;;  %p632_p3 = scmp.lt.u32.totalorder %s907_s19, %s959_s3 }
 0x140   : > { %p633_p7 = scmp.lt.u32.totalorder %s631_s8, %s627_s6  ;;  %p635_p13 = scmp.lt.u32.totalorder %s627_s6, %s907_s19 }
 0x141   : > { %p629_p1 = pnand %p628_p9, %p827_p10 }
 0x142   : > { %p634_p4 = por %p633_p7, %p632_p3 }
 0x143   : > { %p630_p2 = pneg %p629_p1 }
 0x144   : > { %p636_p6 = por %p635_p13, %p634_p4 }
 0x146   : > { %p637_p8 = pnand %p636_p6, %p630_p2 }
 0x148   : > { %640 = shalt.err (!%p637_p8)
}
 0x149   : > { %s706_s10 = smov 128   ;;  %s707_s11 = smov 8  }
 0x14a   : > { %484 = dma.vmem_to_hbm [thread:$0]  (%p827_p10), %s902_s22, 256, %s907_s19, %s321_s25, %s706_s10, %s706_s10, %s707_s11  }
 0x14b PF: > { %s350_s9 = sand.u32 1, %s679_s12   ;;  %p977_p12 = scmp.ne.s32.totalorder %s967_s23, 0 }
 0x14c   : > { %p978_p11 = scmp.ge.s32.totalorder %s699_s17, 2  ;;  %s351_s18 = scalar_lea.sflag [#allocation4], %s350_s9 }
 0x14e   : > { %p495_p0 = pnand %p978_p11, %p977_p12 }
 0x150   : > { %674 = dma.done.wait (!%p495_p0), %s351_s18, 256  }
 0x151   : > { %676 = vsyncadd (!%p495_p0), %s351_s18, 4294967040  ;;  %s20_s17 = sadd.s32 1, %s699_s17   ;;  %s979_s12 = smov %s683_s13 }
 0x152   : > { %p17_p5 = scmp.ge.s32.totalorder %s20_s17, 4   ;;  %s980_s13 = smov %s687_s14 }
 0x153   : > { %s981_s14 = smov %s836_s5  ;;  %s982_s15 = smov %s695_s16 }
 0x154   : > { %s983_s16 = smov %s985_s28  ;;  %19 = sbr.rel (!%p17_p5) target bundleno = 7 (0x7), region = 83 }
 0x15b   :  { %356 = vsyncpa [#allocation3], 1 }
 0x15c   :  { %358 = vsyncpa [#allocation3 + $0x1], 1 }
 0x15d   :  { %359 = vsyncpa [#allocation6], 1 }
 0x15e   :  { %360 = vsyncpa [#allocation4], 1 }
 0x15f   :  { %362 = vsyncpa [#allocation4 + $0x1], 1 }

</bundles_post_ra>
